<compile_context>
chip_gen: v6e
topology: v6e:2x2x1
jax: 0.10.0
libtpu: 0.0.40
codegen_flags: <defaults>
</compile_context>

<pallas_src>
import jax
import jax.numpy as jnp
from jax.experimental import pallas as pl
from jax.experimental.pallas import tpu as pltpu

IN_FEATURES = 784
HIDDEN = 60
HIDDEN_PAD = 128     # lane-dense hidden width (zero padding, numerically exact)
OUT_FEATURES = 10


def _round_up(x, m):
    return ((x + m - 1) // m) * m


def _recip(x):
    """EUP approximate reciprocal + one Newton step (~f32 accuracy, frees the VALU divide)."""
    r = pl.reciprocal(x, approx=True)
    return r * (2.0 - x * r)


def mlp_kernel(x_ref, w1_ref, b1_ref, w2_ref, b2_ref, o_ref):
    # fc1 + sigmoid: MXU matmul with f32 accumulation, activation math in f32.
    h = jnp.dot(x_ref[...], w1_ref[...],
                preferred_element_type=jnp.float32) + b1_ref[...]      # [TB, 128]
    h = _recip(1.0 + jnp.exp(-h))                                      # sigmoid
    # fc2 + softmax over dim=1.
    logits = jnp.dot(h.astype(w2_ref.dtype), w2_ref[...],
                     preferred_element_type=jnp.float32) + b2_ref[...]  # [TB, 10]
    m = jnp.max(logits, axis=1, keepdims=True)
    e = jnp.exp(logits - m)
    denom = jnp.sum(e, axis=1, keepdims=True)
    o_ref[...] = e * _recip(denom)


def mlp_net(x, w1, b1, w2, b2, *, block_b=512, compute_dtype=jnp.bfloat16):
    """Forward pass of MLPNet.

    x: any shape with trailing elements summing to a multiple of 784 (flattened like
       PyTorch's x.view(-1, 784)). Returns softmax probabilities [B, 10] in float32.
    compute_dtype: dtype for x / W1 / W2 fed to the MXU (bf16 halves HBM traffic;
       accumulation and all activation math stay in float32).
    """
    x = x.reshape(-1, IN_FEATURES)
    B = x.shape[0]

    # Zero-pad the hidden dimension to 128 lanes. Padded pre-activations are 0, so
    # sigmoid(0)=0.5 multiplies zero rows of W2 -> logits are unchanged.
    w1p = jnp.zeros((IN_FEATURES, HIDDEN_PAD), compute_dtype)
    w1p = w1p.at[:, :HIDDEN].set(w1.astype(compute_dtype))
    b1p = jnp.zeros((1, HIDDEN_PAD), jnp.float32)
    b1p = b1p.at[:, :HIDDEN].set(b1.reshape(1, HIDDEN).astype(jnp.float32))
    w2p = jnp.zeros((HIDDEN_PAD, OUT_FEATURES), compute_dtype)
    w2p = w2p.at[:HIDDEN, :].set(w2.astype(compute_dtype))
    b2p = b2.reshape(1, OUT_FEATURES).astype(jnp.float32)

    # Batch tiling: big tiles for DMA/compute overlap; pad B up to a multiple of TB.
    tb = min(block_b, _round_up(B, 8))
    b_pad = _round_up(B, tb)
    xp = x.astype(compute_dtype)
    if b_pad != B:
        xp = jnp.pad(xp, ((0, b_pad - B), (0, 0)))
    grid = (b_pad // tb,)

    itemsize = jnp.dtype(compute_dtype).itemsize
    cost = pl.CostEstimate(
        flops=2 * b_pad * (IN_FEATURES * HIDDEN_PAD + HIDDEN_PAD * OUT_FEATURES),
        transcendentals=b_pad * (HIDDEN_PAD + OUT_FEATURES),
        bytes_accessed=(b_pad * IN_FEATURES * itemsize
                        + (IN_FEATURES * HIDDEN_PAD + HIDDEN_PAD * OUT_FEATURES) * itemsize
                        + b_pad * OUT_FEATURES * 4),
    )

    out = pl.pallas_call(
        mlp_kernel,
        out_shape=jax.ShapeDtypeStruct((b_pad, OUT_FEATURES), jnp.float32),
        grid=grid,
        in_specs=[
            # x: tiled along the batch axis (double-buffered by the pipeline).
            pl.BlockSpec((tb, IN_FEATURES), lambda i: (i, 0)),
            # Weights/biases: constant index_map -> stay resident in VMEM across tiles.
            pl.BlockSpec((IN_FEATURES, HIDDEN_PAD), lambda i: (0, 0)),
            pl.BlockSpec((1, HIDDEN_PAD), lambda i: (0, 0)),
            pl.BlockSpec((HIDDEN_PAD, OUT_FEATURES), lambda i: (0, 0)),
            pl.BlockSpec((1, OUT_FEATURES), lambda i: (0, 0)),
        ],
        out_specs=pl.BlockSpec((tb, OUT_FEATURES), lambda i: (i, 0)),
        compiler_params=pltpu.CompilerParams(
            dimension_semantics=("parallel",),   # megacore sharding of the batch axis (v7x)
            vmem_limit_bytes=32 << 20,
        ),
        cost_estimate=cost,
    )(xp, w1p, b1p, w2p, b2p)
    return out[:B]


def init_params(key):
    """Deterministic parameter init matching nn.Linear shapes (stored transposed).

    PyTorch: fc1.weight [60, 784], fc1.bias [60]; fc2.weight [10, 60], fc2.bias [10].
    """
    k1, k2, k3, k4 = jax.random.split(key, 4)
    bound1 = 1.0 / jnp.sqrt(784.0)
    bound2 = 1.0 / jnp.sqrt(60.0)
    w1 = jax.random.uniform(k1, (IN_FEATURES, HIDDEN), jnp.float32, -bound1, bound1)
    b1 = jax.random.uniform(k2, (1, HIDDEN), jnp.float32, -bound1, bound1)
    w2 = jax.random.uniform(k3, (HIDDEN, OUT_FEATURES), jnp.float32, -bound2, bound2)
    b2 = jax.random.uniform(k4, (1, OUT_FEATURES), jnp.float32, -bound2, bound2)
    return w1, b1, w2, b2


def mlp_ref(x, w1, b1, w2, b2, compute_dtype=jnp.float32):
    """Pure-JAX reference mirroring the kernel's dtype policy (f32 accumulation)."""
    xc = x.reshape(-1, IN_FEATURES).astype(compute_dtype)
    h = jnp.dot(xc, w1.astype(compute_dtype),
                preferred_element_type=jnp.float32) + b1.reshape(1, -1)
    h = jax.nn.sigmoid(h)
    logits = jnp.dot(h.astype(compute_dtype), w2.astype(compute_dtype),
                     preferred_element_type=jnp.float32) + b2.reshape(1, -1)
    return jax.nn.softmax(logits, axis=1)


if __name__ == "__main__":
    key = jax.random.PRNGKey(0)
    kx, kp, kx2 = jax.random.split(key, 3)
    w1, b1, w2, b2 = init_params(kp)

    # Small, module-consistent batch: forward starts with x.view(-1, 784).
    x_img = jax.random.normal(kx, (8, 1, 28, 28), jnp.float32)

    # f32 path: exact reference semantics.
    out_f32 = jax.block_until_ready(
        mlp_net(x_img, w1, b1, w2, b2, compute_dtype=jnp.float32))
    ref_f32 = mlp_ref(x_img, w1, b1, w2, b2, jnp.float32)
    assert out_f32.shape == (8, 10)
    assert jnp.allclose(out_f32, ref_f32, atol=1e-4, rtol=1e-4)
    assert jnp.allclose(jnp.sum(out_f32, axis=1), 1.0, atol=1e-4)

    # bf16 x/W path (halves HBM traffic on the mem-bound x stream), f32 accumulation.
    out_bf16 = jax.block_until_ready(
        mlp_net(x_img, w1, b1, w2, b2, compute_dtype=jnp.bfloat16))
    ref_bf16 = mlp_ref(x_img, w1, b1, w2, b2, jnp.bfloat16)
    assert jnp.allclose(out_bf16, ref_bf16, atol=2e-3, rtol=2e-3)

    # Larger batch exercising the tiled grid (grid > 1) and the B % TB != 0 padding path.
    x_big = jax.random.normal(kx2, (1000, IN_FEATURES), jnp.float32)
    out_big = jax.block_until_ready(
        mlp_net(x_big, w1, b1, w2, b2, block_b=512, compute_dtype=jnp.bfloat16))
    ref_big = mlp_ref(x_big, w1, b1, w2, b2, jnp.bfloat16)
    assert out_big.shape == (1000, 10)
    assert jnp.allclose(out_big, ref_big, atol=2e-3, rtol=2e-3)
    assert jnp.allclose(jnp.sum(out_big, axis=1), 1.0, atol=1e-3)

    print("KERNEL_OK")
</pallas_src>

<mosaic_0001>
module attributes {stable_mosaic.version = 11 : i64} {
  func.func @mlp_kernel(%arg0: i32, %arg1: memref<8x784xf32, #tpu.memory_space<vmem>>, %arg2: memref<784x128xf32, #tpu.memory_space<vmem>>, %arg3: memref<1x128xf32, #tpu.memory_space<vmem>>, %arg4: memref<128x10xf32, #tpu.memory_space<vmem>>, %arg5: memref<1x10xf32, #tpu.memory_space<vmem>>, %arg6: memref<8x10xf32, #tpu.memory_space<vmem>>) attributes {dimension_semantics = [#tpu.dimension_semantics<parallel>], iteration_bounds = array<i64: 1>, scalar_prefetch = 0 : i64, scratch_operands = 0 : i64, tpu.core_type = #tpu.core_type<tc>, window_params = [{transform_indices = @transform_0, window_bounds = array<i64: 8, 784>}, {pipeline_mode = #tpu.pipeline_mode<synchronous>, transform_indices = @transform_1, window_bounds = array<i64: 784, 128>}, {pipeline_mode = #tpu.pipeline_mode<synchronous>, transform_indices = @transform_2, window_bounds = array<i64: 1, 128>}, {pipeline_mode = #tpu.pipeline_mode<synchronous>, transform_indices = @transform_3, window_bounds = array<i64: 128, 10>}, {pipeline_mode = #tpu.pipeline_mode<synchronous>, transform_indices = @transform_4, window_bounds = array<i64: 1, 10>}, {transform_indices = @transform_5, window_bounds = array<i64: 8, 10>}]} {
    %c0 = arith.constant 0 : index
    %c0_0 = arith.constant 0 : index
    %0 = vector.load %arg1[%c0, %c0_0] : memref<8x784xf32, #tpu.memory_space<vmem>>, vector<8x784xf32>
    %c0_1 = arith.constant 0 : index
    %c0_2 = arith.constant 0 : index
    %1 = vector.load %arg2[%c0_1, %c0_2] : memref<784x128xf32, #tpu.memory_space<vmem>>, vector<784x128xf32>
    %cst = arith.constant dense<0.000000e+00> : vector<8x128xf32>
    %2 = tpu.matmul %0, %1, %cst {dimension_numbers = #tpu.dot_dimension_numbers<[1], [0], [0], [1], [0, 0, 1, 1], [], []>} : vector<8x784xf32>, vector<784x128xf32>, vector<8x128xf32> -> vector<8x128xf32>
    %c0_3 = arith.constant 0 : index
    %c0_4 = arith.constant 0 : index
    %3 = vector.load %arg3[%c0_3, %c0_4] : memref<1x128xf32, #tpu.memory_space<vmem>>, vector<1x128xf32>
    %4 = vector.broadcast %3 : vector<1x128xf32> to vector<8x128xf32>
    %5 = arith.addf %2, %4 : vector<8x128xf32>
    %cst_5 = arith.constant 0.000000e+00 : f32
    %6 = vector.broadcast %cst_5 : f32 to vector<8x128xf32>
    %7 = arith.subf %6, %5 : vector<8x128xf32>
    %8 = math.exp %7 : vector<8x128xf32>
    %cst_6 = arith.constant 1.000000e+00 : f32
    %9 = vector.broadcast %cst_6 : f32 to vector<8x128xf32>
    %10 = arith.addf %9, %8 : vector<8x128xf32>
    %11 = tpu.reciprocal %10 {approx = true} : vector<8x128xf32> -> vector<8x128xf32>
    %12 = arith.mulf %10, %11 : vector<8x128xf32>
    %cst_7 = arith.constant 2.000000e+00 : f32
    %13 = vector.broadcast %cst_7 : f32 to vector<8x128xf32>
    %14 = arith.subf %13, %12 : vector<8x128xf32>
    %15 = arith.mulf %11, %14 : vector<8x128xf32>
    %c0_8 = arith.constant 0 : index
    %c0_9 = arith.constant 0 : index
    %16 = vector.load %arg4[%c0_8, %c0_9] : memref<128x10xf32, #tpu.memory_space<vmem>>, vector<128x10xf32>
    %cst_10 = arith.constant dense<0.000000e+00> : vector<8x10xf32>
    %17 = tpu.matmul %15, %16, %cst_10 {dimension_numbers = #tpu.dot_dimension_numbers<[1], [0], [0], [1], [0, 0, 1, 1], [], []>} : vector<8x128xf32>, vector<128x10xf32>, vector<8x10xf32> -> vector<8x10xf32>
    %c0_11 = arith.constant 0 : index
    %c0_12 = arith.constant 0 : index
    %18 = vector.load %arg5[%c0_11, %c0_12] : memref<1x10xf32, #tpu.memory_space<vmem>>, vector<1x10xf32>
    %19 = vector.broadcast %18 : vector<1x10xf32> to vector<8x10xf32>
    %20 = arith.addf %17, %19 : vector<8x10xf32>
    %cst_13 = arith.constant dense<0xFF800000> : vector<8xf32>
    %21 = vector.multi_reduction <maximumf>, %20, %cst_13 [1] : vector<8x10xf32> to vector<8xf32>
    %22 = vector.shape_cast %21 : vector<8xf32> to vector<8x1xf32>
    %23 = vector.broadcast %22 : vector<8x1xf32> to vector<8x10xf32>
    %24 = arith.subf %20, %23 : vector<8x10xf32>
    %25 = math.exp %24 : vector<8x10xf32>
    %cst_14 = arith.constant dense<0.000000e+00> : vector<8xf32>
    %26 = vector.multi_reduction <add>, %25, %cst_14 [1] : vector<8x10xf32> to vector<8xf32>
    %27 = vector.shape_cast %26 : vector<8xf32> to vector<8x1xf32>
    %28 = tpu.reciprocal %27 {approx = true} : vector<8x1xf32> -> vector<8x1xf32>
    %29 = arith.mulf %27, %28 : vector<8x1xf32>
    %cst_15 = arith.constant 2.000000e+00 : f32
    %30 = vector.broadcast %cst_15 : f32 to vector<8x1xf32>
    %31 = arith.subf %30, %29 : vector<8x1xf32>
    %32 = arith.mulf %28, %31 : vector<8x1xf32>
    %33 = vector.broadcast %32 : vector<8x1xf32> to vector<8x10xf32>
    %34 = arith.mulf %25, %33 : vector<8x10xf32>
    %c0_16 = arith.constant 0 : index
    %c0_17 = arith.constant 0 : index
    %35 = vector.load %arg6[%c0_16, %c0_17] : memref<8x10xf32, #tpu.memory_space<vmem>>, vector<8x10xf32>
    tpu.vector_store %arg6[%c0_16, %c0_17], %34 {strides = array<i32>} : memref<8x10xf32, #tpu.memory_space<vmem>>, vector<8x10xf32>,
    return
  }
  func.func @transform_0(%arg0: i32) -> (i32, i32) {
    %c0_i32 = arith.constant 0 : i32
    %c0_i32_0 = arith.constant 0 : i32
    return %arg0, %c0_i32 : i32, i32
  }
  func.func @transform_1(%arg0: i32) -> (i32, i32) {
    %c0_i32 = arith.constant 0 : i32
    %c0_i32_0 = arith.constant 0 : i32
    %c0_i32_1 = arith.constant 0 : i32
    return %c0_i32, %c0_i32_0 : i32, i32
  }
  func.func @transform_2(%arg0: i32) -> (i32, i32) {
    %c0_i32 = arith.constant 0 : i32
    %c0_i32_0 = arith.constant 0 : i32
    %c0_i32_1 = arith.constant 0 : i32
    return %c0_i32, %c0_i32_0 : i32, i32
  }
  func.func @transform_3(%arg0: i32) -> (i32, i32) {
    %c0_i32 = arith.constant 0 : i32
    %c0_i32_0 = arith.constant 0 : i32
    %c0_i32_1 = arith.constant 0 : i32
    return %c0_i32, %c0_i32_0 : i32, i32
  }
  func.func @transform_4(%arg0: i32) -> (i32, i32) {
    %c0_i32 = arith.constant 0 : i32
    %c0_i32_0 = arith.constant 0 : i32
    %c0_i32_1 = arith.constant 0 : i32
    return %c0_i32, %c0_i32_0 : i32, i32
  }
  func.func @transform_5(%arg0: i32) -> (i32, i32) {
    %c0_i32 = arith.constant 0 : i32
    %c0_i32_0 = arith.constant 0 : i32
    return %arg0, %c0_i32 : i32, i32
  }
}

</mosaic_0001>

<bundles_post_ra>
// kernel: tpu_custom_call.1
= control target key start
LH: loop header
LB: loop body
LE: loop exit
PB: predicated region body
PF: predicated region fallthrough
CT: control target
= control target key end

     0   :  { %10 = vsyncpa [#allocation3], 0  ;;  %s931_s0 = inlined_call_operand.vmem [shape: f32[8,784], index: 0, kind: input, shape index: {}]   ;;  %s932_s1 = inlined_call_operand.hbm [shape: f32[784,128], index: 1, kind: input, shape index: {}]   ;;  %s933_s2 = inlined_call_operand.vmem [shape: f32[1,128], index: 2, kind: input, shape index: {}]   ;;  %s934_s3 = inlined_call_operand.vmem [shape: f32[128,10], index: 3, kind: input, shape index: {}]   ;;  %s935_s4 = inlined_call_operand.vmem [shape: f32[1,10], index: 4, kind: input, shape index: {}]   ;;  %s936_s5 = inlined_call_operand.hbm [shape: f32[8,10], index: 5, kind: output, shape index: {}]  }
   0x1   :  { %11 = vsyncpa [#allocation4], 0  ;;  %s791_s18 = smov [#allocation2]  }
   0x2   :  { %s19_s19 = sshll.u32 %s791_s18, 4  ;;  %s20_s19 = int_to_ptr.vmem [resolvable:$true] %s19_s19 }
   0x3   :  { %s755_s20 = scalar_lea.vmem %s20_s19, 12544  ;;  %p760_p1 = scmp.lt.s32.totalorder %s20_s19, %s20_s19 }
   0x4   :  { %p756_p0 = scmp.ne.s32.totalorder %s20_s19, %s755_s20  ;;  %p761_p2 = scmp.lt.s32.totalorder %s755_s20, %s755_s20 }
   0x6   :  { %p762_p3 = por %p761_p2, %p760_p1 }
   0x8   :  { %p763_p4 = pnand %p762_p3, %p756_p0 }
   0xa   :  { %766 = shalt.err (!%p763_p4)
}
   0xb   :  { %s792_s21 = smov 128   ;;  %s793_s22 = smov 8  }
   0xc   :  { %25 = dma.hbm_to_vmem [thread:$0]  %s932_s1, 12544, %s20_s19, [#allocation3], %s792_s21, %s792_s21, %s793_s22  }
   0xd   :  { %787 = dma.done.wait [#allocation3], 12544  }
   0xe   :  { %788 = vsyncadd [#allocation3], 4294954752  ;;  %v73_v0 = vld [vmem:[#allocation2 + $0xf8] sm:$0xff]  ;;  %v72_v2 = vld [vmem:[#allocation2 + $0xf0] sm:$0xff]  ;;  %vm147_vm0 = vcmask 130048   ;;  %vm795_vm1 = vmmov 0  }
   0xf   :  { %v57_v1 = vld [vmem:[#allocation2 + $0x78] sm:$0xff]  ;;  %566 = vmatprep.subr.mxu0 %v73_v0  ;;  %v56_v4 = vld [vmem:[#allocation2 + $0x70] sm:$0xff]  ;;  %v71_v6 = vld [vmem:[#allocation2 + $0xe8] sm:$0xff]  ;;  %vm532_vm2 = vcmask 80896  }
  0x10   :  { %v105_v3 = vld [vmem:[#allocation2 + $0x1f8] sm:$0xff]  ;;  %567 = vmatpush3.msra.mxu0 %v57_v1  ;;  %v104_v7 = vld [vmem:[#allocation2 + $0x1f0] sm:$0xff]  ;;  %v55_v8 = vld [vmem:[#allocation2 + $0x68] sm:$0xff] }
  0x11   :  { %v89_v5 = vld [vmem:[#allocation2 + $0x178] sm:$0xff]  ;;  %601 = vmatprep.subr.mxu1 %v105_v3  ;;  %568 = vmatprep.subr.mxu0 %v72_v2  ;;  %v88_v9 = vld [vmem:[#allocation2 + $0x170] sm:$0xff]  ;;  %v103_v10 = vld [vmem:[#allocation2 + $0x1e8] sm:$0xff] }
  0x12   :  { %602 = vmatpush3.msra.mxu1 %v89_v5  ;;  %569 = vmatpush3.msra.mxu0 %v56_v4  ;;  %v70_v11 = vld [vmem:[#allocation2 + $0xe0] sm:$0xff]  ;;  %v87_v12 = vld [vmem:[#allocation2 + $0x168] sm:$0xff]  ;;  %v69_v15 = vld [vmem:[#allocation2 + $0xd8] sm:$0xff] }
  0x13   :  { %603 = vmatprep.subr.mxu1 %v104_v7  ;;  %570 = vmatprep.subr.mxu0 %v71_v6  ;;  %v54_v13 = vld [vmem:[#allocation2 + $0x60] sm:$0xff]  ;;  %v53_v17 = vld [vmem:[#allocation2 + $0x58] sm:$0xff]  ;;  %v68_v19 = vld [vmem:[#allocation2 + $0xd0] sm:$0xff] }
  0x14   :  { %604 = vmatpush3.msra.mxu1 %v88_v9  ;;  %v102_v14 = vld [vmem:[#allocation2 + $0x1e0] sm:$0xff]  ;;  %571 = vmatpush3.msra.mxu0 %v55_v8  ;;  %v101_v18 = vld [vmem:[#allocation2 + $0x1d8] sm:$0xff]  ;;  %v52_v21 = vld [vmem:[#allocation2 + $0x50] sm:$0xff] }
  0x15   :  { %605 = vmatprep.subr.mxu1 %v103_v10  ;;  %v86_v16 = vld [vmem:[#allocation2 + $0x160] sm:$0xff]  ;;  %572 = vmatprep.subr.mxu0 %v70_v11  ;;  %v85_v20 = vld [vmem:[#allocation2 + $0x158] sm:$0xff]  ;;  %v100_v22 = vld [vmem:[#allocation2 + $0x1d0] sm:$0xff] }
  0x16   :  { %606 = vmatpush3.msra.mxu1 %v87_v12  ;;  %573 = vmatpush3.msra.mxu0 %v54_v13  ;;  %v67_v23 = vld [vmem:[#allocation2 + $0xc8] sm:$0xff]  ;;  %v84_v24 = vld [vmem:[#allocation2 + $0x150] sm:$0xff]  ;;  %v66_v27 = vld [vmem:[#allocation2 + $0xc0] sm:$0xff] }
  0x17   :  { %607 = vmatprep.subr.mxu1 %v102_v14  ;;  %574 = vmatprep.subr.mxu0 %v69_v15  ;;  %v51_v25 = vld [vmem:[#allocation2 + $0x48] sm:$0xff]  ;;  %v50_v29 = vld [vmem:[#allocation2 + $0x40] sm:$0xff]  ;;  %v65_v31 = vld [vmem:[#allocation2 + $0xb8] sm:$0xff]  ;;  %v794_v14 = vmov 0.0  }
  0x18   :  { %608 = vmatpush3.msra.mxu1 %v86_v16  ;;  %575 = vmatpush3.msra.mxu0 %v53_v17  ;;  %v99_v26 = vld [vmem:[#allocation2 + $0x1c8] sm:$0xff]  ;;  %v98_v30 = vld [vmem:[#allocation2 + $0x1c0] sm:$0xff]  ;;  %v49_v33 = vld [vmem:[#allocation2 + $0x38] sm:$0xff] }
  0x19   :  { %609 = vmatprep.subr.mxu1 %v101_v18  ;;  %576 = vmatprep.subr.mxu0 %v68_v19  ;;  %v83_v28 = vld [vmem:[#allocation2 + $0x148] sm:$0xff]  ;;  %v82_v32 = vld [vmem:[#allocation2 + $0x140] sm:$0xff]  ;;  %v97_v34 = vld [vmem:[#allocation2 + $0x1b8] sm:$0xff] }
  0x1a   :  { %610 = vmatpush3.msra.mxu1 %v85_v20  ;;  %577 = vmatpush3.msra.mxu0 %v52_v21  ;;  %v64_v35 = vld [vmem:[#allocation2 + $0xb0] sm:$0xff]  ;;  %v81_v36 = vld [vmem:[#allocation2 + $0x138] sm:$0xff]  ;;  %v63_v39 = vld [vmem:[#allocation2 + $0xa8] sm:$0xff] }
  0x1b   :  { %611 = vmatprep.subr.mxu1 %v100_v22  ;;  %578 = vmatprep.subr.mxu0 %v67_v23  ;;  %v48_v37 = vld [vmem:[#allocation2 + $0x30] sm:$0xff]  ;;  %v47_v41 = vld [vmem:[#allocation2 + $0x28] sm:$0xff]  ;;  %v62_v43 = vld [vmem:[#allocation2 + $0xa0] sm:$0xff] }
  0x1c   :  { %612 = vmatpush3.msra.mxu1 %v84_v24  ;;  %579 = vmatpush3.msra.mxu0 %v51_v25  ;;  %v96_v38 = vld [vmem:[#allocation2 + $0x1b0] sm:$0xff]  ;;  %v95_v42 = vld [vmem:[#allocation2 + $0x1a8] sm:$0xff]  ;;  %v46_v45 = vld [vmem:[#allocation2 + $0x20] sm:$0xff] }
  0x1d   :  { %613 = vmatprep.subr.mxu1 %v99_v26  ;;  %580 = vmatprep.subr.mxu0 %v66_v27  ;;  %v80_v40 = vld [vmem:[#allocation2 + $0x130] sm:$0xff]  ;;  %v79_v44 = vld [vmem:[#allocation2 + $0x128] sm:$0xff]  ;;  %v94_v46 = vld [vmem:[#allocation2 + $0x1a0] sm:$0xff] }
  0x1e   :  { %614 = vmatpush3.msra.mxu1 %v83_v28  ;;  %581 = vmatpush3.msra.mxu0 %v50_v29  ;;  %v61_v47 = vld [vmem:[#allocation2 + $0x98] sm:$0xff]  ;;  %v78_v48 = vld [vmem:[#allocation2 + $0x120] sm:$0xff]  ;;  %v60_v51 = vld [vmem:[#allocation2 + $0x90] sm:$0xff] }
  0x1f   :  { %615 = vmatprep.subr.mxu1 %v98_v30  ;;  %582 = vmatprep.subr.mxu0 %v65_v31  ;;  %v45_v49 = vld [vmem:[#allocation2 + $0x18] sm:$0xff]  ;;  %v44_v53 = vld [vmem:[#allocation2 + $0x10] sm:$0xff]  ;;  %v59_v55 = vld [vmem:[#allocation2 + $0x88] sm:$0xff] }
  0x20   :  { %616 = vmatpush3.msra.mxu1 %v82_v32  ;;  %583 = vmatpush3.msra.mxu0 %v49_v33  ;;  %v93_v50 = vld [vmem:[#allocation2 + $0x198] sm:$0xff]  ;;  %v92_v54 = vld [vmem:[#allocation2 + $0x190] sm:$0xff]  ;;  %v43_v57 = vld [vmem:[#allocation2 + $0x8] sm:$0xff] }
  0x21   :  { %617 = vmatprep.subr.mxu1 %v97_v34  ;;  %584 = vmatprep.subr.mxu0 %v64_v35  ;;  %v77_v52 = vld [vmem:[#allocation2 + $0x118] sm:$0xff]  ;;  %v76_v56 = vld [vmem:[#allocation2 + $0x110] sm:$0xff]  ;;  %v91_v58 = vld [vmem:[#allocation2 + $0x188] sm:$0xff] }
  0x22   :  { %618 = vmatpush3.msra.mxu1 %v81_v36  ;;  %585 = vmatpush3.msra.mxu0 %v48_v37  ;;  %v58_v59 = vld [vmem:[#allocation2 + $0x80] sm:$0xff]  ;;  %v36_v60 = vld [vmem:[%s931_s0 + $0x8] sm:$0xff]  ;;  %v137_v1 = vld [vmem:[#allocation2 + $0x2f8] sm:$0xff] }
  0x23   :  { %619 = vmatprep.subr.mxu1 %v96_v38  ;;  %586 = vmatprep.subr.mxu0 %v63_v39  ;;  %v42_v61 = vld [vmem:[#allocation2] sm:$0xff]  ;;  %v75_v62 = vld [vmem:[#allocation2 + $0x108] sm:$0xff]  ;;  %v38_v3 = vld [vmem:[%s931_s0 + $0x18] sm:$0xff] }
  0x24   :  { %620 = vmatpush3.msra.mxu1 %v80_v40  ;;  %587 = vmatpush3.msra.mxu0 %v47_v41  ;;  %v35_v63 = vld [vmem:[%s931_s0] sm:$0xff]  ;;  %v121_v4 = vld [vmem:[#allocation2 + $0x278] sm:$0xff]  ;;  %v37_v5 = vld [vmem:[%s931_s0 + $0x10] sm:$0xff] }
  0x25   :  { %621 = vmatprep.subr.mxu1 %v95_v42  ;;  %588 = vmatprep.subr.mxu0 %v62_v43  ;;  %v90_v0 = vld [vmem:[#allocation2 + $0x180] sm:$0xff]  ;;  %v136_v6 = vld [vmem:[#allocation2 + $0x2f0] sm:$0xff]  ;;  %v40_v8 = vld [vmem:[%s931_s0 + $0x28] sm:$0xff] }
  0x26   :  { %622 = vmatpush3.msra.mxu1 %v79_v44  ;;  %589 = vmatpush3.msra.mxu0 %v46_v45  ;;  %v74_v2 = vld [vmem:[#allocation2 + $0x100] sm:$0xff]  ;;  %v120_v7 = vld [vmem:[#allocation2 + $0x270] sm:$0xff]  ;;  %v135_v9 = vld [vmem:[#allocation2 + $0x2e8] sm:$0xff] }
  0x27   :  { %623 = vmatprep.subr.mxu1 %v94_v46  ;;  %590 = vmatprep.subr.mxu0 %v61_v47  ;;  %v119_v10 = vld [vmem:[#allocation2 + $0x268] sm:$0xff]  ;;  %v134_v12 = vld [vmem:[#allocation2 + $0x2e0] sm:$0xff]  ;;  %v133_v16 = vld [vmem:[#allocation2 + $0x2d8] sm:$0xff] }
  0x28   :  { %624 = vmatpush3.msra.mxu1 %v78_v48  ;;  %591 = vmatpush3.msra.mxu0 %v45_v49  ;;  %v139_v11 = vld [vmem:[#allocation2 + $0x308] sm:$0xff]  ;;  %v118_v13 = vld [vmem:[#allocation2 + $0x260] sm:$0xff]  ;;  %v117_v17 = vld [vmem:[#allocation2 + $0x258] sm:$0xff] }
  0x29   :  { %625 = vmatprep.subr.mxu1 %v93_v50  ;;  %592 = vmatprep.subr.mxu0 %v60_v51  ;;  %v138_v15 = vld [vmem:[#allocation2 + $0x300] sm:$0xff]  ;;  %v41_v18 = vld [vmem:[%s931_s0 + $0x30] sm:$0xff]  ;;  %v131_v21 = vld [vmem:[#allocation2 + $0x2c8] sm:$0xff] }
  0x2a   :  { %626 = vmatpush3.msra.mxu1 %v77_v52  ;;  %593 = vmatpush3.msra.mxu0 %v44_v53  ;;  %v132_v19 = vld [vmem:[#allocation2 + $0x2d0] sm:$0xff]  ;;  %v115_v22 = vld [vmem:[#allocation2 + $0x248] sm:$0xff]  ;;  %v130_v23 = vld [vmem:[#allocation2 + $0x2c0] sm:$0xff] }
  0x2b   :  { %627 = vmatprep.subr.mxu1 %v92_v54  ;;  %594 = vmatprep.subr.mxu0 %v59_v55  ;;  %v116_v20 = vld [vmem:[#allocation2 + $0x250] sm:$0xff]  ;;  %v114_v24 = vld [vmem:[#allocation2 + $0x240] sm:$0xff]  ;;  %v129_v25 = vld [vmem:[#allocation2 + $0x2b8] sm:$0xff] }
  0x2c   :  { %628 = vmatpush3.msra.mxu1 %v76_v56  ;;  %595 = vmatpush3.msra.mxu0 %v43_v57  ;;  %v113_v26 = vld [vmem:[#allocation2 + $0x238] sm:$0xff]  ;;  %v128_v27 = vld [vmem:[#allocation2 + $0x2b0] sm:$0xff]  ;;  %v127_v29 = vld [vmem:[#allocation2 + $0x2a8] sm:$0xff] }
  0x2d   :  { %629 = vmatprep.subr.mxu1 %v91_v58  ;;  %596 = vmatprep.subr.mxu0 %v58_v59  ;;  %v112_v28 = vld [vmem:[#allocation2 + $0x230] sm:$0xff]  ;;  %v111_v30 = vld [vmem:[#allocation2 + $0x228] sm:$0xff]  ;;  %v126_v31 = vld [vmem:[#allocation2 + $0x2a0] sm:$0xff] }
  0x2e   :  { %215 = vmatprep.mubr.f32.mxu0 %v36_v60  ;;  %597 = vmatpush3.msra.mxu0 %v42_v61  ;;  %v110_v32 = vld [vmem:[#allocation2 + $0x220] sm:$0xff]  ;;  %v125_v33 = vld [vmem:[#allocation2 + $0x298] sm:$0xff]  ;;  %v124_v35 = vld [vmem:[#allocation2 + $0x290] sm:$0xff] }
  0x2f   :  { %630 = vmatpush3.msra.mxu1 %v75_v62  ;;  %216 = vmatmul.mubr.f32.vlgmr.msra.gmra.mxu0 %v35_v63  ;;  %v109_v34 = vld [vmem:[#allocation2 + $0x218] sm:$0xff]  ;;  %v108_v36 = vld [vmem:[#allocation2 + $0x210] sm:$0xff]  ;;  %v123_v37 = vld [vmem:[#allocation2 + $0x288] sm:$0xff] }
  0x30   :  { %631 = vmatprep.subr.mxu1 %v90_v0  ;;  %636 = vmatprep.subr.mxu0 %v137_v1  ;;  %v107_v38 = vld [vmem:[#allocation2 + $0x208] sm:$0xff]  ;;  %v122_v39 = vld [vmem:[#allocation2 + $0x280] sm:$0xff]  ;;  %v454_v42 = vld [vmem:[%s934_s3 + $0x78] sm:$0xff] }
  0x31   :  { %632 = vmatpush3.msra.mxu1 %v74_v2  ;;  %285 = vmatprep.mubr.f32.mxu1 %v38_v3  ;;  %v106_v40 = vld [vmem:[#allocation2 + $0x200] sm:$0xff]  ;;  %v453_v43 = vld [vmem:[%s934_s3 + $0x70] sm:$0xff]  ;;  %v452_v44 = vld [vmem:[%s934_s3 + $0x68] sm:$0xff] }
  0x32   :  { %637 = vmatpush3.msra.mxu0 %v121_v4  ;;  %286 = vmatmul.mubr.f32.vlgmr.msra.gmra.mxu1 %v37_v5  ;;  %v39_v41 = vld [vmem:[%s931_s0 + $0x20] sm:$0xff]  ;;  %v450_v46 = vld [vmem:[%s934_s3 + $0x58] sm:$0xff]  ;;  %v449_v47 = vld [vmem:[%s934_s3 + $0x50] sm:$0xff] }
  0x33   :  { %638 = vmatprep.subr.mxu0 %v136_v6  ;;  %355 = vmatprep.mubr.f32.mxu0 %v40_v8  ;;  %v451_v45 = vld [vmem:[%s934_s3 + $0x60] sm:$0xff]  ;;  %v448_v48 = vld [vmem:[%s934_s3 + $0x48] sm:$0xff]  ;;  %v446_v50 = vld [vmem:[%s934_s3 + $0x38] sm:$0xff] }
  0x34   :  { %639 = vmatpush3.msra.mxu0 %v120_v7  ;;  %691 = vmatprep.subr.mxu1 %v794_v14  ;;  %v447_v49 = vld [vmem:[%s934_s3 + $0x40] sm:$0xff]  ;;  %v445_v51 = vld [vmem:[%s934_s3 + $0x30] sm:$0xff]  ;;  %v444_v52 = vld [vmem:[%s934_s3 + $0x28] sm:$0xff] }
  0x35   :  { %640 = vmatprep.subr.mxu0 %v135_v9  ;;  %692 = vmatpush3.msra.mxu1 %v139_v11  ;;  %v443_v53 = vld [vmem:[%s934_s3 + $0x20] sm:$0xff]  ;;  %v442_v54 = vld [vmem:[%s934_s3 + $0x18] sm:$0xff]  ;;  %v441_v55 = vld [vmem:[%s934_s3 + $0x10] sm:$0xff] }
  0x36   :  { %641 = vmatpush3.msra.mxu0 %v119_v10  ;;  %693 = vmatprep.subr.mxu1 %v794_v14  ;;  %v440_v56 = vld [vmem:[%s934_s3 + $0x8] sm:$0xff]  ;;  %v439_v57 = vld [vmem:[%s934_s3] sm:$0xff] }
  0x37   :  { %642 = vmatprep.subr.mxu0 %v134_v12  ;;  %694 = vmatpush3.msra.mxu1 %v138_v15  ;;  %v563_v1 = vld [vmem:[%s933_s2] ss:$0 sm:$0xff] }
  0x38   :  { %643 = vmatpush3.msra.mxu0 %v118_v13  ;;  %695 = vmatprep.mubr.msk.f32.mxu1 %vm795_vm1, %v794_v14 }
  0x39   :  { %644 = vmatprep.subr.mxu0 %v133_v16  ;;  %696 = vmatmul.mubr.msk.f32.vlgmr.msra.gmra.mxu1 %vm147_vm0, %v41_v18  ;;  %v565_v18 = vld [vmem:[%s935_s4] ss:$0 sm:$0xff]  ;;  %s796_s4 = smov [#allocation5]  }
  0x3a   :  { %645 = vmatpush3.msra.mxu0 %v117_v17  ;;  %698 = vmatprep.subr.mxu1 %v794_v14  ;;  %s554_s19 = sshll.u32 %s796_s4, 4  ;;  %s555_s19 = int_to_ptr.vmem [resolvable:$true] %s554_s19 }
  0x3b   :  { %646 = vmatprep.subr.mxu0 %v132_v19  ;;  %730 = vmatprep.mubr.msk.f32.mxu1 %vm795_vm1, %v794_v14  ;;  %s767_s20 = scalar_lea.vmem %s555_s19, 128  ;;  %p772_p6 = scmp.lt.s32.totalorder %s555_s19, %s555_s19 }
  0x3c   :  { %647 = vmatpush3.msra.mxu0 %v116_v20  ;;  %699 = vmatpush3.msra.mxu1 %v454_v42  ;;  %p768_p5 = scmp.ne.s32.totalorder %s555_s19, %s767_s20  ;;  %p773_p7 = scmp.lt.s32.totalorder %s767_s20, %s767_s20 }
  0x3d   :  { %648 = vmatprep.subr.mxu0 %v131_v21  ;;  %700 = vmatprep.subr.mxu1 %v794_v14 }
  0x3e   :  { %649 = vmatpush3.msra.mxu0 %v115_v22  ;;  %701 = vmatpush3.msra.mxu1 %v453_v43  ;;  %p774_p8 = por %p773_p7, %p772_p6 }
  0x3f   :  { %650 = vmatprep.subr.mxu0 %v130_v23  ;;  %702 = vmatprep.subr.mxu1 %v794_v14 }
  0x40   :  { %651 = vmatpush3.msra.mxu0 %v114_v24  ;;  %703 = vmatpush3.msra.mxu1 %v452_v44  ;;  %p775_p9 = pnand %p774_p8, %p768_p5 }
  0x41   :  { %652 = vmatprep.subr.mxu0 %v129_v25  ;;  %704 = vmatprep.subr.mxu1 %v794_v14 }
  0x42   :  { %653 = vmatpush3.msra.mxu0 %v113_v26  ;;  %705 = vmatpush3.msra.mxu1 %v451_v45 }
  0x43   :  { %654 = vmatprep.subr.mxu0 %v128_v27  ;;  %706 = vmatprep.subr.mxu1 %v794_v14 }
  0x44   :  { %655 = vmatpush3.msra.mxu0 %v112_v28  ;;  %707 = vmatpush3.msra.mxu1 %v450_v46 }
  0x45   :  { %656 = vmatprep.subr.mxu0 %v127_v29  ;;  %708 = vmatprep.subr.mxu1 %v794_v14 }
  0x46   :  { %657 = vmatpush3.msra.mxu0 %v111_v30  ;;  %709 = vmatpush3.msra.mxu1 %v449_v47 }
  0x47   :  { %658 = vmatprep.subr.mxu0 %v126_v31  ;;  %710 = vmatprep.subr.mxu1 %v794_v14 }
  0x48   :  { %659 = vmatpush3.msra.mxu0 %v110_v32  ;;  %711 = vmatpush3.msra.mxu1 %v448_v48 }
  0x49   :  { %660 = vmatprep.subr.mxu0 %v125_v33  ;;  %712 = vmatprep.subr.mxu1 %v794_v14 }
  0x4a   :  { %661 = vmatpush3.msra.mxu0 %v109_v34  ;;  %713 = vmatpush3.msra.mxu1 %v447_v49 }
  0x4b   :  { %662 = vmatprep.subr.mxu0 %v124_v35  ;;  %714 = vmatprep.subr.mxu1 %v794_v14 }
  0x4c   :  { %663 = vmatpush3.msra.mxu0 %v108_v36  ;;  %715 = vmatpush3.msra.mxu1 %v446_v50 }
  0x4d   :  { %664 = vmatprep.subr.mxu0 %v123_v37  ;;  %716 = vmatprep.subr.mxu1 %v794_v14 }
  0x4e   :  { %665 = vmatpush3.msra.mxu0 %v107_v38  ;;  %717 = vmatpush3.msra.mxu1 %v445_v51 }
  0x4f   :  { %666 = vmatprep.subr.mxu0 %v122_v39  ;;  %718 = vmatprep.subr.mxu1 %v794_v14 }
  0x50   :  { %667 = vmatpush3.msra.mxu0 %v106_v40  ;;  %719 = vmatpush3.msra.mxu1 %v444_v52 }
  0x51   :  { %356 = vmatmul.mubr.f32.vlgmr.msra.gmra.mxu0 %v39_v41  ;;  %720 = vmatprep.subr.mxu1 %v794_v14 }
  0x52   :  { %721 = vmatpush3.msra.mxu1 %v443_v53 }
  0x53   :  { %722 = vmatprep.subr.mxu1 %v794_v14 }
  0x54   :  { %723 = vmatpush3.msra.mxu1 %v442_v54 }
  0x55   :  { %724 = vmatprep.subr.mxu1 %v794_v14 }
  0x56   :  { %725 = vmatpush3.msra.mxu1 %v441_v55 }
  0x57   :  { %726 = vmatprep.subr.mxu1 %v794_v14 }
  0x58   :  { %727 = vmatpush3.msra.mxu1 %v440_v56 }
  0x59   :  { %728 = vmatprep.subr.mxu1 %v794_v14 }
  0x5a   :  { %729 = vmatpush3.msra.mxu1 %v439_v57 }
  0xef   :  { %v598_v62 = vpop.f32.mrf.mxu0 }
  0xf1   :  { %v599_v63 = vpop.f32.mrf.mxu0 }
  0xf2   :  { %v633_v58 = vpop.f32.mrf.mxu1  ;;  %v600_v0 = vadd.f32 %v599_v63, %v598_v62 }
  0xf4   :  { %v634_v59 = vpop.f32.mrf.mxu1  ;;  %v218_v2 = vadd.f32 %v600_v0, %v563_v1 }
  0xf5   :  { %v635_v3 = vadd.f32 %v634_v59, %v633_v58 }
  0xf7   :  { %v288_v6 = vadd.f32 %v635_v3, %v218_v2 }
  0xf9   :  { %v427_v60 = vpop.f32.mrf.mxu1 }
  0xfb   :  { %v697_v61 = vpop.f32.mrf.mxu1 }
 0x111   :  { %v668_v4 = vpop.f32.mrf.mxu0 }
 0x113   :  { %v669_v5 = vpop.f32.mrf.mxu0 }
 0x114   :  { %v670_v7 = vadd.f32 %v669_v5, %v668_v4 }
 0x116   :  { %v358_v8 = vadd.f32 %v670_v7, %v288_v6 }
 0x118   :  { %v428_v9 = vadd.f32 %v427_v60, %v358_v8 }
 0x11a   :  { %v431_v10 = vsub.f32 0.0, %v428_v9 }
 0x11c   :  { %v432_v11 = vmul.f32 1.442695, %v431_v10 }
 0x11e   :  { %739 = vpow2.f32 %v432_v11 }
 0x12b   :  { %v740_v12 = vpop.eup %739 }
 0x12c   :  { %v434_v13 = vadd.f32 1.0, %v740_v12 }
 0x12e   :  { %741 = vrcp.f32 %v434_v13 }
 0x13b   :  { %v742_v14 = vpop.eup %741 }
 0x13c   :  { %v436_v15 = vmul.f32 %v742_v14, %v434_v13 }
 0x13e   :  { %v437_v16 = vsub.f32 2.0, %v436_v15 }
 0x140   :  { %v438_v17 = vmul.f32 %v742_v14, %v437_v16 }
 0x142   :  { %731 = vmatmul.mubr.f32.vlgmr.msra.gmra.mxu1 %v438_v17 }
 0x202   :  { %v528_v19 = vpop.f32.mrf.mxu1 }
 0x203   :  { %v529_v20 = vadd.f32 %v565_v18, %v528_v19 }
 0x204   :  { %v732_v21 = vpop.f32.mrf.mxu1 }
 0x205   :  { %v533_v22 = vsel %vm532_vm2, %v529_v20, -inf }
 0x206   :  { %534 = vmax.xlane.f32.xlu0 %v533_v22 }
 0x28f   :  { %v535_v23 = vpop.xlane.xlu0 %534 }
 0x290   :  { %v536_v24 = vsub.f32 %v529_v20, %v535_v23 }
 0x292   :  { %v537_v25 = vmul.f32 1.442695, %v536_v24 }
 0x294   :  { %743 = vpow2.f32 %v537_v25 }
 0x2a1   :  { %v744_v26 = vpop.eup %743 }
 0x2a2   :  { %v539_v27 = vsel %vm532_vm2, %v744_v26, 0.0 }
 0x2a3   :  { %540 = vadd.xlane.f32.xlu0 %v539_v27 }
 0x32c   :  { %v541_v28 = vpop.xlane.xlu0 %540 }
 0x32d   :  { %745 = vrcp.f32 %v541_v28 }
 0x33a   :  { %v746_v29 = vpop.eup %745 }
 0x33b   :  { %v543_v30 = vmul.f32 %v746_v29, %v541_v28 }
 0x33d   :  { %v544_v31 = vsub.f32 2.0, %v543_v30 }
 0x33f   :  { %v545_v32 = vmul.f32 %v746_v29, %v544_v31 }
 0x341   :  { %v546_v33 = vmul.f32 %v744_v26, %v545_v32 }
 0x343   :  { %547 = vst.msk [vmem:[#allocation5] sm:$0xff] %vm532_vm2, %v546_v33 }
 0x344   :  { %778 = shalt.err (!%p775_p9)
}
 0x345   :  { %557 = dma.vmem_to_hbm [thread:$0]  %s555_s19, 128, %s936_s5, [#allocation4]  }
 0x346   :  { %789 = dma.done.wait [#allocation4], 128  }
 0x347   :  { %790 = vsyncadd [#allocation4], 4294967168 }
 0x348   :  { %561 = vsyncpa [#allocation3], 1 }
 0x349   :  { %562 = vsyncpa [#allocation4], 1 }

</bundles_post_ra>
